<compile_context>
chip_gen: v5e
topology: v5e:2x2
jax: 0.10.0
libtpu: 0.0.40
codegen_flags: <defaults>
</compile_context>

<pallas_src>
import functools

import jax
import jax.numpy as jnp
from jax.experimental import pallas as pl
from jax.experimental.pallas import tpu as pltpu


def _round_up(x: int, m: int) -> int:
    return ((x + m - 1) // m) * m


def _chip_info():
    """(device_kind, tensorcores_per_device, physical_vmem_bytes) — best effort."""
    kind = ""
    try:
        kind = (jax.devices()[0].device_kind or "").lower()
    except Exception:
        pass
    if "v7" in kind:                           # v7x: 2 TensorCores, 64 MiB VMEM / TC
        return kind, 2, 64 * 1024 * 1024
    if any(g in kind for g in ("v4", "v5", "v6")):
        return kind, 1, 128 * 1024 * 1024      # v5e / v6e: 1 TC, 128 MiB VMEM
    return kind, 1, 64 * 1024 * 1024           # unknown: conservative defaults


def _default_compute_dtype(kind: str):
    # bf16 MXU operands on v6e/v7x (the 918/996 TF/s path); f32 elsewhere/unknown.
    return jnp.bfloat16 if ("v6" in kind or "v7" in kind) else jnp.float32


def _finalize_tile_b(tile_b: int, batch: int) -> int:
    """Clamp + lane-align the batch tile (the batch lives on the 128-lane axis)."""
    tile_b = max(1, min(int(tile_b), batch))
    if tile_b < batch:
        tile_b = _round_up(tile_b, 128)        # partial tiles must be 128-aligned
        if tile_b >= batch:
            tile_b = batch
    return tile_b


# ----------------------------------------------------------------------------
# Fused whole-network kernel (transposed, lane-dense layout)
# ----------------------------------------------------------------------------
def _fused_mlp_kernel(*refs, n_layers: int, compute_dtype):
    # refs = (xT_ref, w0_ref, b0_ref, ..., w{L-1}_ref, b{L-1}_ref, oT_ref)
    # Activations are (features, batch_tile): batch on the lane axis -> full-width
    # VPU bias-add / tanh and unmasked output stores.
    xT_ref = refs[0]
    oT_ref = refs[-1]

    h = xT_ref[...]                                   # (Din, tile_b)
    for l in range(n_layers):
        w_ref = refs[1 + 2 * l]                       # (Dout, Din), pre-cast to compute_dtype
        b_ref = refs[2 + 2 * l]                       # (Dout, 1), f32
        y = jnp.dot(w_ref[...], h.astype(compute_dtype),
                    preferred_element_type=jnp.float32)   # MXU, f32 accumulate
        y = y + b_ref[...]                            # f32 bias-add (v5e-safe)
        if l < n_layers - 1:
            y = jnp.tanh(y)                           # EUP, f32
        h = y
    oT_ref[...] = h.astype(oT_ref.dtype)


def _fused_call(x_t, prepared, *, out_dtype, tile_b, compute_dtype,
                vmem_limit_bytes, semantics, single_buffer_weights):
    din0, batch = x_t.shape
    d_out = prepared[-1][0].shape[0]
    n_layers = len(prepared)
    steps = pl.cdiv(batch, tile_b)

    # Grid-invariant weight/bias blocks do not need double-buffering.
    w_kwargs = {"pipeline_mode": pl.Buffered(1)} if single_buffer_weights else {}

    in_specs = [pl.BlockSpec((din0, tile_b), lambda i: (0, i))]   # x^T batch tile
    flat_inputs = [x_t]
    for (w, b) in prepared:
        dout, din = w.shape
        in_specs.append(pl.BlockSpec((dout, din), lambda i: (0, 0), **w_kwargs))
        in_specs.append(pl.BlockSpec((dout, 1), lambda i: (0, 0), **w_kwargs))
        flat_inputs.append(w)
        flat_inputs.append(b)

    kernel = functools.partial(_fused_mlp_kernel, n_layers=n_layers,
                               compute_dtype=compute_dtype)
    return pl.pallas_call(
        kernel,
        out_shape=jax.ShapeDtypeStruct((d_out, batch), out_dtype),
        grid_spec=pltpu.PrefetchScalarGridSpec(
            num_scalar_prefetch=0,
            grid=(steps,),
            in_specs=in_specs,
            out_specs=pl.BlockSpec((d_out, tile_b), lambda i: (0, i)),
        ),
        compiler_params=pltpu.CompilerParams(
            dimension_semantics=semantics,
            vmem_limit_bytes=vmem_limit_bytes,
        ),
    )(*flat_inputs)


def fused_mlp_forward(params, x, *, compute_dtype=None, tile_b=None):
    """Forward pass of Net as a single fused Pallas kernel.

    params: list of (w, b); w is (Dout, Din) (native PyTorch Linear layout),
            b is (Dout, 1).  x is (B, Din); returns (B, Dout_last).
    """
    batch, din0 = x.shape
    kind, n_cores, phys_vmem = _chip_info()
    if compute_dtype is None:
        compute_dtype = _default_compute_dtype(kind)

    # Pre-cast weights to the MXU operand dtype in the wrapper (halves weight
    # DMA + VMEM residency for bf16, removes the in-kernel cast).  Biases stay f32.
    prepared = [(w.astype(compute_dtype), b.astype(jnp.float32)) for (w, b) in params]
    d_out = prepared[-1][0].shape[0]
    widths = [din0] + [w.shape[0] for (w, _) in prepared]

    # Generation-aware VMEM plan (v7x: 64 MiB physical; v5e/v6e: 128 MiB).
    vmem_limit_bytes = min(phys_vmem // 2, 64 * 1024 * 1024)
    budget = int(0.8 * vmem_limit_bytes)
    weight_bytes = sum(w.size * w.dtype.itemsize + b.size * b.dtype.itemsize
                       for (w, b) in prepared)
    if 2 * weight_bytes > budget:   # worst case: weights still double-buffered
        # TODO(synk): for huge layers, keep the fusion and stream weights with a
        # K/N-tiled reduction grid / pltpu.emit_pipeline while activations stay
        # VMEM-resident, instead of round-tripping activations through HBM.
        return _mlp_layer_by_layer(prepared, x, compute_dtype=compute_dtype)

    # Batch tiling (batch = lane axis).  Default: ONE tile on single-TC chips
    # (extra grid steps there are pure per-step overhead); split only on 2-TC
    # hardware (v7x) so each half lands on a different TensorCore.
    if tile_b is None:
        if n_cores > 1 and batch >= n_cores * 128:
            tile_b = _round_up(pl.cdiv(batch, n_cores), 128)
        elif batch <= 1024:
            tile_b = batch
        else:
            tile_b = 512
    tile_b = _finalize_tile_b(tile_b, batch)

    # Shrink the batch tile if the double-buffered x/y tiles + live f32
    # activations would overflow the budget (weights remain resident).
    itemsize = x.dtype.itemsize

    def _total_vmem(tb):
        io = 2 * tb * din0 * itemsize + 2 * tb * d_out * itemsize
        act = 3 * max(widths) * tb * 4
        return 2 * weight_bytes + io + act

    while tile_b > 128 and _total_vmem(tile_b) > budget:
        tile_b = _finalize_tile_b(tile_b // 2, batch)

    steps = pl.cdiv(batch, tile_b)
    if n_cores > 1 and steps >= n_cores:
        semantics = (pltpu.CORE_PARALLEL,)   # actually shard across the 2 TCs (v7x)
    else:
        semantics = ("arbitrary",)           # 1 TC: parallel vs arbitrary is neutral

    x_t = x.T    # layout plumbing: put the batch on the lane axis
    kwargs = dict(out_dtype=x.dtype, tile_b=tile_b, compute_dtype=compute_dtype,
                  vmem_limit_bytes=vmem_limit_bytes)
    try:
        out_t = _fused_call(x_t, prepared, semantics=semantics,
                            single_buffer_weights=True, **kwargs)
    except Exception:
        # Conservative retry if this jax/TPU rejects Buffered(1) / CORE_PARALLEL.
        out_t = _fused_call(x_t, prepared, semantics=("arbitrary",),
                            single_buffer_weights=False, **kwargs)
    return out_t.T


# ----------------------------------------------------------------------------
# Fallback: one pallas_call per layer (only if weights exceed the VMEM budget).
# Keeps the lane-dense transposed layout and carries f32 activations between
# layers (no precision loss vs. the fused path).
# ----------------------------------------------------------------------------
def _linear_t_kernel(x_ref, w_ref, b_ref, o_ref, *, apply_tanh: bool, compute_dtype):
    y = jnp.dot(w_ref[...], x_ref[...].astype(compute_dtype),
                preferred_element_type=jnp.float32)
    y = y + b_ref[...]
    if apply_tanh:
        y = jnp.tanh(y)
    o_ref[...] = y.astype(o_ref.dtype)


def _pallas_linear_t(h_t, w, b, *, apply_tanh, compute_dtype, out_dtype, tile_b=512):
    din, batch = h_t.shape
    dout = w.shape[0]
    tb = _finalize_tile_b(tile_b, batch)
    kernel = functools.partial(_linear_t_kernel, apply_tanh=apply_tanh,
                               compute_dtype=compute_dtype)
    return pl.pallas_call(
        kernel,
        out_shape=jax.ShapeDtypeStruct((dout, batch), out_dtype),
        grid_spec=pltpu.PrefetchScalarGridSpec(
            num_scalar_prefetch=0,
            grid=(pl.cdiv(batch, tb),),
            in_specs=[pl.BlockSpec((din, tb), lambda i: (0, i)),
                      pl.BlockSpec((dout, din), lambda i: (0, 0)),
                      pl.BlockSpec((dout, 1), lambda i: (0, 0))],
            out_specs=pl.BlockSpec((dout, tb), lambda i: (0, i)),
        ),
        compiler_params=pltpu.CompilerParams(dimension_semantics=("arbitrary",)),
    )(h_t, w, b)


def _mlp_layer_by_layer(prepared, x, *, compute_dtype):
    n_layers = len(prepared)
    h_t = x.T
    for l, (w, b) in enumerate(prepared):
        last = l == n_layers - 1
        h_t = _pallas_linear_t(h_t, w, b, apply_tanh=not last,
                               compute_dtype=compute_dtype,
                               out_dtype=(x.dtype if last else jnp.float32))
    return h_t.T


# ----------------------------------------------------------------------------
# Parameter init (mirrors Net.init_weights: xavier_uniform weights, bias=0.01)
# ----------------------------------------------------------------------------
def init_net_params(config, key):
    """Weights keep PyTorch's native (out, in) layout; biases are (out, 1) columns
    so they broadcast over the lane/batch axis in the transposed kernel layout."""
    params = []
    n_layers = len(config) - 1
    keys = jax.random.split(key, n_layers)
    for l in range(n_layers):
        fan_in, fan_out = config[l], config[l + 1]
        bound = (6.0 / (fan_in + fan_out)) ** 0.5
        w = jax.random.uniform(keys[l], (fan_out, fan_in),
                               minval=-bound, maxval=bound, dtype=jnp.float32)
        b = jnp.full((fan_out, 1), 0.01, jnp.float32)
        params.append((w, b))
    return params


def net_forward(params, x, *, compute_dtype=None, tile_b=None):
    """Forward pass of Net: (Linear -> Tanh) * (L-1) -> Linear, fully fused."""
    return fused_mlp_forward(params, x, compute_dtype=compute_dtype, tile_b=tile_b)


def net_forward_ref(params, x):
    """Pure-JAX reference (row-major, f32)."""
    h = x
    n_layers = len(params)
    for l, (w, b) in enumerate(params):
        h = h @ w.T + b[:, 0]
        if l < n_layers - 1:
            h = jnp.tanh(h)
    return h


if __name__ == "__main__":
    # config mirrors the PyTorch ctor arg: [in_dim, hidden..., out_dim]
    config = [16, 32, 32, 8]
    batch = 256                      # multiple of 128 -> fully lane-dense stores

    key = jax.random.PRNGKey(0)
    k_params, k_x, k_xr = jax.random.split(key, 3)
    params = init_net_params(config, k_params)
    x = jax.random.normal(k_x, (batch, config[0]), dtype=jnp.float32)
    ref = net_forward_ref(params, x)

    # 1) f32 MXU operands: numerically matches the pure-JAX reference.
    out = jax.block_until_ready(net_forward(params, x, compute_dtype=jnp.float32))
    assert out.shape == (batch, config[-1])
    assert jnp.allclose(out, ref, atol=1e-5, rtol=1e-5), float(jnp.max(jnp.abs(out - ref)))

    # 2) Default compute dtype (bf16 weights/MXU on v6e/v7x, f32 elsewhere).
    out_fast = jax.block_until_ready(net_forward(params, x))
    assert jnp.allclose(out_fast, ref, atol=5e-2, rtol=5e-2), \
        float(jnp.max(jnp.abs(out_fast - ref)))

    # 3) Ragged batch (B % tile_b != 0): exercises the masked last batch tile.
    xr = jax.random.normal(k_xr, (320, config[0]), dtype=jnp.float32)
    ref_r = net_forward_ref(params, xr)
    out_r = jax.block_until_ready(
        net_forward(params, xr, compute_dtype=jnp.float32, tile_b=128))
    assert jnp.allclose(out_r, ref_r, atol=1e-5, rtol=1e-5), \
        float(jnp.max(jnp.abs(out_r - ref_r)))

    print("KERNEL_OK")
</pallas_src>

<mosaic_0001>
module attributes {stable_mosaic.version = 11 : i64} {
  func.func @_fused_mlp_kernel(%arg0: i32, %arg1: memref<16x256xf32, #tpu.memory_space<vmem>>, %arg2: memref<32x16xf32, #tpu.memory_space<vmem>>, %arg3: memref<32x1xf32, #tpu.memory_space<vmem>>, %arg4: memref<32x32xf32, #tpu.memory_space<vmem>>, %arg5: memref<32x1xf32, #tpu.memory_space<vmem>>, %arg6: memref<8x32xf32, #tpu.memory_space<vmem>>, %arg7: memref<8x1xf32, #tpu.memory_space<vmem>>, %arg8: memref<8x256xf32, #tpu.memory_space<vmem>>) attributes {dimension_semantics = [#tpu.dimension_semantics<arbitrary>], iteration_bounds = array<i64: 1>, scalar_prefetch = 0 : i64, scratch_operands = 0 : i64, tpu.core_type = #tpu.core_type<tc>, window_params = [{transform_indices = @transform_0, window_bounds = array<i64: 16, 256>}, {pipeline_mode = #tpu.pipeline_mode<synchronous>, transform_indices = @transform_1, window_bounds = array<i64: 32, 16>}, {pipeline_mode = #tpu.pipeline_mode<synchronous>, transform_indices = @transform_2, window_bounds = array<i64: 32, 1>}, {pipeline_mode = #tpu.pipeline_mode<synchronous>, transform_indices = @transform_3, window_bounds = array<i64: 32, 32>}, {pipeline_mode = #tpu.pipeline_mode<synchronous>, transform_indices = @transform_4, window_bounds = array<i64: 32, 1>}, {pipeline_mode = #tpu.pipeline_mode<synchronous>, transform_indices = @transform_5, window_bounds = array<i64: 8, 32>}, {pipeline_mode = #tpu.pipeline_mode<synchronous>, transform_indices = @transform_6, window_bounds = array<i64: 8, 1>}, {transform_indices = @transform_7, window_bounds = array<i64: 8, 256>}]} {
    %c0 = arith.constant 0 : index
    %c0_0 = arith.constant 0 : index
    %0 = vector.load %arg1[%c0, %c0_0] : memref<16x256xf32, #tpu.memory_space<vmem>>, vector<16x256xf32>
    %c0_1 = arith.constant 0 : index
    %c0_2 = arith.constant 0 : index
    %1 = vector.load %arg2[%c0_1, %c0_2] : memref<32x16xf32, #tpu.memory_space<vmem>>, vector<32x16xf32>
    %cst = arith.constant dense<0.000000e+00> : vector<32x256xf32>
    %2 = tpu.matmul %1, %0, %cst {dimension_numbers = #tpu.dot_dimension_numbers<[1], [0], [0], [1], [0, 0, 1, 1], [], []>} : vector<32x16xf32>, vector<16x256xf32>, vector<32x256xf32> -> vector<32x256xf32>
    %c0_3 = arith.constant 0 : index
    %c0_4 = arith.constant 0 : index
    %3 = vector.load %arg3[%c0_3, %c0_4] : memref<32x1xf32, #tpu.memory_space<vmem>>, vector<32x1xf32>
    %4 = vector.broadcast %3 : vector<32x1xf32> to vector<32x256xf32>
    %5 = arith.addf %2, %4 : vector<32x256xf32>
    %6 = math.tanh %5 : vector<32x256xf32>
    %c0_5 = arith.constant 0 : index
    %c0_6 = arith.constant 0 : index
    %7 = vector.load %arg4[%c0_5, %c0_6] : memref<32x32xf32, #tpu.memory_space<vmem>>, vector<32x32xf32>
    %cst_7 = arith.constant dense<0.000000e+00> : vector<32x256xf32>
    %8 = tpu.matmul %7, %6, %cst_7 {dimension_numbers = #tpu.dot_dimension_numbers<[1], [0], [0], [1], [0, 0, 1, 1], [], []>} : vector<32x32xf32>, vector<32x256xf32>, vector<32x256xf32> -> vector<32x256xf32>
    %c0_8 = arith.constant 0 : index
    %c0_9 = arith.constant 0 : index
    %9 = vector.load %arg5[%c0_8, %c0_9] : memref<32x1xf32, #tpu.memory_space<vmem>>, vector<32x1xf32>
    %10 = vector.broadcast %9 : vector<32x1xf32> to vector<32x256xf32>
    %11 = arith.addf %8, %10 : vector<32x256xf32>
    %12 = math.tanh %11 : vector<32x256xf32>
    %c0_10 = arith.constant 0 : index
    %c0_11 = arith.constant 0 : index
    %13 = vector.load %arg6[%c0_10, %c0_11] : memref<8x32xf32, #tpu.memory_space<vmem>>, vector<8x32xf32>
    %cst_12 = arith.constant dense<0.000000e+00> : vector<8x256xf32>
    %14 = tpu.matmul %13, %12, %cst_12 {dimension_numbers = #tpu.dot_dimension_numbers<[1], [0], [0], [1], [0, 0, 1, 1], [], []>} : vector<8x32xf32>, vector<32x256xf32>, vector<8x256xf32> -> vector<8x256xf32>
    %c0_13 = arith.constant 0 : index
    %c0_14 = arith.constant 0 : index
    %15 = vector.load %arg7[%c0_13, %c0_14] : memref<8x1xf32, #tpu.memory_space<vmem>>, vector<8x1xf32>
    %16 = vector.broadcast %15 : vector<8x1xf32> to vector<8x256xf32>
    %17 = arith.addf %14, %16 : vector<8x256xf32>
    %c0_15 = arith.constant 0 : index
    %c0_16 = arith.constant 0 : index
    %18 = vector.load %arg8[%c0_15, %c0_16] : memref<8x256xf32, #tpu.memory_space<vmem>>, vector<8x256xf32>
    tpu.vector_store %arg8[%c0_15, %c0_16], %17 {strides = array<i32>} : memref<8x256xf32, #tpu.memory_space<vmem>>, vector<8x256xf32>,
    return
  }
  func.func @transform_0(%arg0: i32) -> (i32, i32) {
    %c0_i32 = arith.constant 0 : i32
    %c0_i32_0 = arith.constant 0 : i32
    return %c0_i32, %arg0 : i32, i32
  }
  func.func @transform_1(%arg0: i32) -> (i32, i32) {
    %c0_i32 = arith.constant 0 : i32
    %c0_i32_0 = arith.constant 0 : i32
    %c0_i32_1 = arith.constant 0 : i32
    return %c0_i32, %c0_i32_0 : i32, i32
  }
  func.func @transform_2(%arg0: i32) -> (i32, i32) {
    %c0_i32 = arith.constant 0 : i32
    %c0_i32_0 = arith.constant 0 : i32
    %c0_i32_1 = arith.constant 0 : i32
    return %c0_i32, %c0_i32_0 : i32, i32
  }
  func.func @transform_3(%arg0: i32) -> (i32, i32) {
    %c0_i32 = arith.constant 0 : i32
    %c0_i32_0 = arith.constant 0 : i32
    %c0_i32_1 = arith.constant 0 : i32
    return %c0_i32, %c0_i32_0 : i32, i32
  }
  func.func @transform_4(%arg0: i32) -> (i32, i32) {
    %c0_i32 = arith.constant 0 : i32
    %c0_i32_0 = arith.constant 0 : i32
    %c0_i32_1 = arith.constant 0 : i32
    return %c0_i32, %c0_i32_0 : i32, i32
  }
  func.func @transform_5(%arg0: i32) -> (i32, i32) {
    %c0_i32 = arith.constant 0 : i32
    %c0_i32_0 = arith.constant 0 : i32
    %c0_i32_1 = arith.constant 0 : i32
    return %c0_i32, %c0_i32_0 : i32, i32
  }
  func.func @transform_6(%arg0: i32) -> (i32, i32) {
    %c0_i32 = arith.constant 0 : i32
    %c0_i32_0 = arith.constant 0 : i32
    %c0_i32_1 = arith.constant 0 : i32
    return %c0_i32, %c0_i32_0 : i32, i32
  }
  func.func @transform_7(%arg0: i32) -> (i32, i32) {
    %c0_i32 = arith.constant 0 : i32
    %c0_i32_0 = arith.constant 0 : i32
    return %c0_i32, %arg0 : i32, i32
  }
}

module attributes {stable_mosaic.version = 11 : i64} {
  func.func @_fused_mlp_kernel(%arg0: i32, %arg1: memref<16x256xf32, #tpu.memory_space<vmem>>, %arg2: memref<32x16xf32, #tpu.memory_space<vmem>>, %arg3: memref<32x1xf32, #tpu.memory_space<vmem>>, %arg4: memref<32x32xf32, #tpu.memory_space<vmem>>, %arg5: memref<32x1xf32, #tpu.memory_space<vmem>>, %arg6: memref<8x32xf32, #tpu.memory_space<vmem>>, %arg7: memref<8x1xf32, #tpu.memory_space<vmem>>, %arg8: memref<8x256xf32, #tpu.memory_space<vmem>>) attributes {dimension_semantics = [#tpu.dimension_semantics<arbitrary>], iteration_bounds = array<i64: 1>, scalar_prefetch = 0 : i64, scratch_operands = 0 : i64, tpu.core_type = #tpu.core_type<tc>, window_params = [{transform_indices = @transform_0, window_bounds = array<i64: 16, 256>}, {pipeline_mode = #tpu.pipeline_mode<synchronous>, transform_indices = @transform_1, window_bounds = array<i64: 32, 16>}, {pipeline_mode = #tpu.pipeline_mode<synchronous>, transform_indices = @transform_2, window_bounds = array<i64: 32, 1>}, {pipeline_mode = #tpu.pipeline_mode<synchronous>, transform_indices = @transform_3, window_bounds = array<i64: 32, 32>}, {pipeline_mode = #tpu.pipeline_mode<synchronous>, transform_indices = @transform_4, window_bounds = array<i64: 32, 1>}, {pipeline_mode = #tpu.pipeline_mode<synchronous>, transform_indices = @transform_5, window_bounds = array<i64: 8, 32>}, {pipeline_mode = #tpu.pipeline_mode<synchronous>, transform_indices = @transform_6, window_bounds = array<i64: 8, 1>}, {transform_indices = @transform_7, window_bounds = array<i64: 8, 256>}]} {
    %c0 = arith.constant 0 : index
    %c0_0 = arith.constant 0 : index
    %0 = vector.load %arg1[%c0, %c0_0] : memref<16x256xf32, #tpu.memory_space<vmem>>, vector<16x256xf32>
    %c0_1 = arith.constant 0 : index
    %c0_2 = arith.constant 0 : index
    %1 = vector.load %arg2[%c0_1, %c0_2] : memref<32x16xf32, #tpu.memory_space<vmem>>, vector<32x16xf32>
    %cst = arith.constant dense<0.000000e+00> : vector<32x256xf32>
    %2 = tpu.matmul %1, %0, %cst {dimension_numbers = #tpu.dot_dimension_numbers<[1], [0], [0], [1], [0, 0, 1, 1], [], []>} : vector<32x16xf32>, vector<16x256xf32>, vector<32x256xf32> -> vector<32x256xf32>
    %c0_3 = arith.constant 0 : index
    %c0_4 = arith.constant 0 : index
    %3 = vector.load %arg3[%c0_3, %c0_4] : memref<32x1xf32, #tpu.memory_space<vmem>>, vector<32x1xf32>
    %4 = vector.broadcast %3 : vector<32x1xf32> to vector<32x256xf32>
    %5 = arith.addf %2, %4 : vector<32x256xf32>
    %6 = math.tanh %5 : vector<32x256xf32>
    %c0_5 = arith.constant 0 : index
    %c0_6 = arith.constant 0 : index
    %7 = vector.load %arg4[%c0_5, %c0_6] : memref<32x32xf32, #tpu.memory_space<vmem>>, vector<32x32xf32>
    %cst_7 = arith.constant dense<0.000000e+00> : vector<32x256xf32>
    %8 = tpu.matmul %7, %6, %cst_7 {dimension_numbers = #tpu.dot_dimension_numbers<[1], [0], [0], [1], [0, 0, 1, 1], [], []>} : vector<32x32xf32>, vector<32x256xf32>, vector<32x256xf32> -> vector<32x256xf32>
    %c0_8 = arith.constant 0 : index
    %c0_9 = arith.constant 0 : index
    %9 = vector.load %arg5[%c0_8, %c0_9] : memref<32x1xf32, #tpu.memory_space<vmem>>, vector<32x1xf32>
    %10 = vector.broadcast %9 : vector<32x1xf32> to vector<32x256xf32>
    %11 = arith.addf %8, %10 : vector<32x256xf32>
    %12 = math.tanh %11 : vector<32x256xf32>
    %c0_10 = arith.constant 0 : index
    %c0_11 = arith.constant 0 : index
    %13 = vector.load %arg6[%c0_10, %c0_11] : memref<8x32xf32, #tpu.memory_space<vmem>>, vector<8x32xf32>
    %cst_12 = arith.constant dense<0.000000e+00> : vector<8x256xf32>
    %14 = tpu.matmul %13, %12, %cst_12 {dimension_numbers = #tpu.dot_dimension_numbers<[1], [0], [0], [1], [0, 0, 1, 1], [], []>} : vector<8x32xf32>, vector<32x256xf32>, vector<8x256xf32> -> vector<8x256xf32>
    %c0_13 = arith.constant 0 : index
    %c0_14 = arith.constant 0 : index
    %15 = vector.load %arg7[%c0_13, %c0_14] : memref<8x1xf32, #tpu.memory_space<vmem>>, vector<8x1xf32>
    %16 = vector.broadcast %15 : vector<8x1xf32> to vector<8x256xf32>
    %17 = arith.addf %14, %16 : vector<8x256xf32>
    %c0_15 = arith.constant 0 : index
    %c0_16 = arith.constant 0 : index
    %18 = vector.load %arg8[%c0_15, %c0_16] : memref<8x256xf32, #tpu.memory_space<vmem>>, vector<8x256xf32>
    tpu.vector_store %arg8[%c0_15, %c0_16], %17 {strides = array<i32>} : memref<8x256xf32, #tpu.memory_space<vmem>>, vector<8x256xf32>,
    return
  }
  func.func @transform_0(%arg0: i32) -> (i32, i32) {
    %c0_i32 = arith.constant 0 : i32
    %c0_i32_0 = arith.constant 0 : i32
    return %c0_i32, %arg0 : i32, i32
  }
  func.func @transform_1(%arg0: i32) -> (i32, i32) {
    %c0_i32 = arith.constant 0 : i32
    %c0_i32_0 = arith.constant 0 : i32
    %c0_i32_1 = arith.constant 0 : i32
    return %c0_i32, %c0_i32_0 : i32, i32
  }
  func.func @transform_2(%arg0: i32) -> (i32, i32) {
    %c0_i32 = arith.constant 0 : i32
    %c0_i32_0 = arith.constant 0 : i32
    %c0_i32_1 = arith.constant 0 : i32
    return %c0_i32, %c0_i32_0 : i32, i32
  }
  func.func @transform_3(%arg0: i32) -> (i32, i32) {
    %c0_i32 = arith.constant 0 : i32
    %c0_i32_0 = arith.constant 0 : i32
    %c0_i32_1 = arith.constant 0 : i32
    return %c0_i32, %c0_i32_0 : i32, i32
  }
  func.func @transform_4(%arg0: i32) -> (i32, i32) {
    %c0_i32 = arith.constant 0 : i32
    %c0_i32_0 = arith.constant 0 : i32
    %c0_i32_1 = arith.constant 0 : i32
    return %c0_i32, %c0_i32_0 : i32, i32
  }
  func.func @transform_5(%arg0: i32) -> (i32, i32) {
    %c0_i32 = arith.constant 0 : i32
    %c0_i32_0 = arith.constant 0 : i32
    %c0_i32_1 = arith.constant 0 : i32
    return %c0_i32, %c0_i32_0 : i32, i32
  }
  func.func @transform_6(%arg0: i32) -> (i32, i32) {
    %c0_i32 = arith.constant 0 : i32
    %c0_i32_0 = arith.constant 0 : i32
    %c0_i32_1 = arith.constant 0 : i32
    return %c0_i32, %c0_i32_0 : i32, i32
  }
  func.func @transform_7(%arg0: i32) -> (i32, i32) {
    %c0_i32 = arith.constant 0 : i32
    %c0_i32_0 = arith.constant 0 : i32
    return %c0_i32, %arg0 : i32, i32
  }
}

</mosaic_0001>

<bundles_post_ra>
// kernel: tpu_custom_call.1
= control target key start
LH: loop header
LB: loop body
LE: loop exit
PB: predicated region body
PF: predicated region fallthrough
CT: control target
= control target key end

     0   :  { %vm59_vm0 = vcmask 130048   ;;  %v394_v5 = vmov 0   ;;  %s523_s0 = inlined_call_operand.vmem [shape: f32[16,256], index: 0, kind: input, shape index: {}]   ;;  %s524_s1 = inlined_call_operand.vmem [shape: f32[32,16], index: 1, kind: input, shape index: {}]   ;;  %s525_s2 = inlined_call_operand.vmem [shape: f32[32,1], index: 2, kind: input, shape index: {}]   ;;  %s526_s3 = inlined_call_operand.vmem [shape: f32[32,32], index: 3, kind: input, shape index: {}]   ;;  %s527_s4 = inlined_call_operand.vmem [shape: f32[32,1], index: 4, kind: input, shape index: {}]   ;;  %s528_s5 = inlined_call_operand.vmem [shape: f32[8,32], index: 5, kind: input, shape index: {}]   ;;  %s529_s6 = inlined_call_operand.vmem [shape: f32[8,1], index: 6, kind: input, shape index: {}]   ;;  %s530_s7 = inlined_call_operand.hbm [shape: f32[8,256], index: 7, kind: output, shape index: {}]  }
   0x1   :  { %v29_v0 = vld [vmem:[%s523_s0 + $0x10] sm:$0xff]  ;;  %v30_v1 = vld [vmem:[%s523_s0 + $0x18] sm:$0xff]  ;;  %v27_v2 = vld [vmem:[%s523_s0] sm:$0xff]  ;;  %334 = vset.pattern.permute.xlu1 %v394_v5  ;;  %333 = vset.pattern.permute.xlu0 %v394_v5 }
   0x2   :  { %86 = vmatpush.msra.mxu0 %v29_v0  ;;  %115 = vmatpush.msra.mxu1 %v30_v1  ;;  %v28_v3 = vld [vmem:[%s523_s0 + $0x8] sm:$0xff]  ;;  %v31_v4 = vld [vmem:[%s524_s1] sm:$0xff]  ;;  %v38_v7 = vld [vmem:[%s525_s2 + $0x18] sm:$0xff] }
   0x3   :  { %v36_v6 = vld [vmem:[%s525_s2 + $0x8] sm:$0xff] }
   0x4   :  { %87 = vmatpush.msra.mxu0 %v27_v2  ;;  %116 = vmatpush.msra.mxu1 %v28_v3 }
   0x5   :  { %313 = vmatmul.msk.f32.vlgmr.msra.gmra.mxu0 %vm59_vm0, %v31_v4  ;;  %317 = vmatmul.msk.f32.vlgmr.msra.gmra.mxu1 %vm59_vm0, %v31_v4 }
   0x6   :  { %12 = vsyncpa [#allocation3], 0  ;;  %46 = vperm.xlu1 %334, %v36_v6   ;;  %56 = vperm.xlu0 %333, %v38_v7   ;;  %v32_v8 = vld [vmem:[%s524_s1 + $0x8] sm:$0xff]  ;;  %v35_v9 = vld [vmem:[%s525_s2] sm:$0xff]  ;;  %vm166_vm1 = vcmask 261120   ;;  %s395_s15 = smov [#allocation2]  }
   0x7   :  { %335 = vset.pattern.permute.xlu2 %v394_v5  ;;  %v37_v10 = vld [vmem:[%s525_s2 + $0x10] sm:$0xff]  ;;  %v143_v12 = vld [vmem:[%s527_s4 + $0x8] sm:$0xff]  ;;  %v142_v13 = vld [vmem:[%s527_s4] sm:$0xff]  ;;  %s302_s16 = sshll.u32 %s395_s15, 4  ;;  %s304_s19 = sshll.u32 %s530_s7, 4  ;;  %s303_s16 = int_to_ptr.vmem [resolvable:$true] %s302_s16  ;;  %s305_s19 = int_to_ptr.hbm [resolvable:$true] %s304_s19 }
   0x8   :  { %v33_v11 = vld [vmem:[%s524_s1 + $0x10] sm:$0xff]  ;;  %v34_v14 = vld [vmem:[%s524_s1 + $0x18] sm:$0xff]  ;;  %v138_v42 = vld [vmem:[%s526_s3] sm:$0xff] }
   0x9   :  { %v145_v37 = vld [vmem:[%s527_s4 + $0x18] sm:$0xff]  ;;  %v144_v45 = vld [vmem:[%s527_s4 + $0x10] sm:$0xff]  ;;  %v139_v46 = vld [vmem:[%s526_s3 + $0x8] sm:$0xff] }
   0xa   :  { %163 = vperm.xlu2 %335, %v145_v37   ;;  %v246_v47 = vld [vmem:[%s529_s6] sm:$0xff]  ;;  %v140_v48 = vld [vmem:[%s526_s3 + $0x10] sm:$0xff]  ;;  %v141_v49 = vld [vmem:[%s526_s3 + $0x18] sm:$0xff] }
   0xd   :  { %314 = vmatmul.msk.f32.gmra.mxu0 %vm59_vm0, %v32_v8  ;;  %318 = vmatmul.msk.f32.gmra.mxu1 %vm59_vm0, %v32_v8 }
   0xe   :  { %41 = vperm.xlu1 %334, %v35_v9   ;;  %51 = vperm.xlu0 %333, %v37_v10  }
  0x12   :  { %158 = vperm.xlu2 %335, %v144_v45  }
  0x15   :  { %315 = vmatmul.msk.f32.gmra.mxu0 %vm59_vm0, %v33_v11  ;;  %319 = vmatmul.msk.f32.gmra.mxu1 %vm59_vm0, %v33_v11 }
  0x16   :  { %153 = vperm.xlu0 %333, %v143_v12   ;;  %148 = vperm.xlu1 %334, %v142_v13   ;;  %v245_v12 = vld [vmem:[%s528_s5] sm:$0xff] }
  0x1a   :  { %249 = vperm.xlu2 %335, %v246_v47  }
  0x1d   :  { %316 = vmatmul.msk.f32.gmra.mxu0 %vm59_vm0, %v34_v14  ;;  %320 = vmatmul.msk.f32.gmra.mxu1 %vm59_vm0, %v34_v14 }
  0x64   :  { %v164_v54 = vpop.permute.xlu2 %163 }
  0x6c   :  { %v159_v57 = vpop.permute.xlu2 %158 }
  0x78   :  { %v57_v19 = vpop.permute.xlu0 %56  ;;  %v47_v20 = vpop.permute.xlu1 %46 }
  0x80   :  { %v52_v23 = vpop.permute.xlu0 %51  ;;  %v42_v29 = vpop.permute.xlu1 %41 }
  0x82   :  { %v89_v15 = vpop.f32.mrf.mxu0  ;;  %v118_v16 = vpop.f32.mrf.mxu1 }
  0x83   :  { %v90_v33 = vadd.f32 %v89_v15, %v42_v29  ;;  %v119_v34 = vadd.f32 %v118_v16, %v42_v29  ;;  %v250_v15 = vpop.permute.xlu2 %249 }
  0x88   :  { %v154_v62 = vpop.permute.xlu0 %153  ;;  %v149_v2 = vpop.permute.xlu1 %148 }
  0x8a   :  { %v92_v17 = vpop.f32.mrf.mxu0  ;;  %v121_v18 = vpop.f32.mrf.mxu1 }
  0x8b   :  { %v93_v31 = vadd.f32 %v92_v17, %v47_v20  ;;  %v122_v32 = vadd.f32 %v121_v18, %v47_v20 }
  0x92   :  { %v95_v21 = vpop.f32.mrf.mxu0  ;;  %v124_v22 = vpop.f32.mrf.mxu1 }
  0x93   :  { %v96_v26 = vadd.f32 %v95_v21, %v52_v23  ;;  %v125_v30 = vadd.f32 %v124_v22, %v52_v23 }
  0x9a   :  { %v98_v24 = vpop.f32.mrf.mxu0  ;;  %v127_v25 = vpop.f32.mrf.mxu1 }
  0x9b   :  { %v99_v27 = vadd.f32 %v98_v24, %v57_v19  ;;  %v128_v28 = vadd.f32 %v127_v25, %v57_v19 }
  0x9d   :  { %336 = vtanh.f32 %v99_v27 }
  0x9e   :  { %338 = vtanh.f32 %v128_v28 }
  0x9f   :  { %340 = vtanh.f32 %v96_v26 }
  0xa0   :  { %342 = vtanh.f32 %v125_v30 }
  0xa1   :  { %344 = vtanh.f32 %v93_v31 }
  0xa2   :  { %346 = vtanh.f32 %v122_v32 }
  0xa3   :  { %v337_v35 = vpop.eup %336  ;;  %348 = vtanh.f32 %v90_v33 }
  0xa4   :  { %v339_v36 = vpop.eup %338  ;;  %350 = vtanh.f32 %v119_v34  ;;  %191 = vmatpush.msra.mxu2 %v337_v35 }
  0xa5   :  { %v341_v38 = vpop.eup %340  ;;  %220 = vmatpush.msra.mxu3 %v339_v36 }
  0xa6   :  { %v343_v39 = vpop.eup %342  ;;  %192 = vmatpush.msra.mxu2 %v341_v38 }
  0xa7   :  { %v345_v40 = vpop.eup %344  ;;  %221 = vmatpush.msra.mxu3 %v343_v39 }
  0xa8   :  { %v347_v41 = vpop.eup %346  ;;  %193 = vmatpush.msra.mxu2 %v345_v40 }
  0xa9   :  { %v349_v43 = vpop.eup %348  ;;  %222 = vmatpush.msra.mxu3 %v347_v41 }
  0xaa   :  { %v351_v44 = vpop.eup %350  ;;  %194 = vmatpush.msra.mxu2 %v349_v43 }
  0xab   :  { %223 = vmatpush.msra.mxu3 %v351_v44  ;;  %321 = vmatmul.msk.f32.vlgmr.msra.gmra.mxu2 %vm166_vm1, %v138_v42 }
  0xac   :  { %325 = vmatmul.msk.f32.vlgmr.msra.gmra.mxu3 %vm166_vm1, %v138_v42 }
  0xb3   :  { %322 = vmatmul.msk.f32.gmra.mxu2 %vm166_vm1, %v139_v46 }
  0xb4   :  { %326 = vmatmul.msk.f32.gmra.mxu3 %vm166_vm1, %v139_v46 }
  0xbb   :  { %323 = vmatmul.msk.f32.gmra.mxu2 %vm166_vm1, %v140_v48 }
  0xbc   :  { %327 = vmatmul.msk.f32.gmra.mxu3 %vm166_vm1, %v140_v48 }
  0xc3   :  { %324 = vmatmul.msk.f32.gmra.mxu2 %vm166_vm1, %v141_v49 }
  0xc4   :  { %328 = vmatmul.msk.f32.gmra.mxu3 %vm166_vm1, %v141_v49 }
 0x12e   :  { %v196_v50 = vpop.f32.mrf.mxu2 }
 0x12f   :  { %v225_v51 = vpop.f32.mrf.mxu3  ;;  %v197_v4 = vadd.f32 %v196_v50, %v149_v2 }
 0x130   :  { %v226_v5 = vadd.f32 %v225_v51, %v149_v2 }
 0x136   :  { %v199_v52 = vpop.f32.mrf.mxu2 }
 0x137   :  { %v228_v53 = vpop.f32.mrf.mxu3  ;;  %v200_v1 = vadd.f32 %v199_v52, %v154_v62 }
 0x138   :  { %v229_v3 = vadd.f32 %v228_v53, %v154_v62 }
 0x13e   :  { %v202_v55 = vpop.f32.mrf.mxu2 }
 0x13f   :  { %v231_v56 = vpop.f32.mrf.mxu3  ;;  %v203_v59 = vadd.f32 %v202_v55, %v159_v57 }
 0x140   :  { %v232_v63 = vadd.f32 %v231_v56, %v159_v57 }
 0x146   :  { %v205_v58 = vpop.f32.mrf.mxu2 }
 0x147   :  { %v206_v60 = vadd.f32 %v205_v58, %v164_v54  ;;  %v234_v61 = vpop.f32.mrf.mxu3 }
 0x148   :  { %v235_v0 = vadd.f32 %v234_v61, %v164_v54 }
 0x149   :  { %352 = vtanh.f32 %v206_v60 }
 0x14a   :  { %354 = vtanh.f32 %v235_v0 }
 0x14b   :  { %356 = vtanh.f32 %v203_v59 }
 0x14c   :  { %358 = vtanh.f32 %v232_v63 }
 0x14d   :  { %360 = vtanh.f32 %v200_v1 }
 0x14e   :  { %362 = vtanh.f32 %v229_v3 }
 0x14f   :  { %v353_v6 = vpop.eup %352  ;;  %364 = vtanh.f32 %v197_v4 }
 0x150   :  { %v355_v7 = vpop.eup %354  ;;  %366 = vtanh.f32 %v226_v5  ;;  %267 = vmatpush.msrb.mxu0 %v353_v6 }
 0x151   :  { %v357_v8 = vpop.eup %356  ;;  %287 = vmatpush.msrb.mxu1 %v355_v7 }
 0x152   :  { %v359_v9 = vpop.eup %358  ;;  %268 = vmatpush.msrb.mxu0 %v357_v8 }
 0x153   :  { %v361_v10 = vpop.eup %360  ;;  %288 = vmatpush.msrb.mxu1 %v359_v9 }
 0x154   :  { %v363_v11 = vpop.eup %362  ;;  %269 = vmatpush.msrb.mxu0 %v361_v10 }
 0x155   :  { %v365_v13 = vpop.eup %364  ;;  %289 = vmatpush.msrb.mxu1 %v363_v11 }
 0x156   :  { %v367_v14 = vpop.eup %366  ;;  %270 = vmatpush.msrb.mxu0 %v365_v13 }
 0x157   :  { %290 = vmatpush.msrb.mxu1 %v367_v14  ;;  %329 = vmatmul.msk.f32.vlgmr.msrb.gmra.mxu0 %vm166_vm1, %v245_v12 }
 0x158   :  { %330 = vmatmul.msk.f32.vlgmr.msrb.gmra.mxu1 %vm166_vm1, %v245_v12 }
 0x1d4   :  { %v272_v16 = vpop.f32.mrf.mxu0 }
 0x1d5   :  { %v273_v17 = vadd.f32 %v272_v16, %v250_v15  ;;  %v292_v18 = vpop.f32.mrf.mxu1 }
 0x1d6   :  { %v293_v19 = vadd.f32 %v292_v18, %v250_v15 }
 0x1d7   :  { %295 = vst [vmem:[#allocation2] sm:$0xff] %v273_v17 }
 0x1d8   :  { %296 = vst [vmem:[#allocation2 + $0x8] sm:$0xff] %v293_v19 }
 0x1d9   :  { %307 = dma.vmem_to_hbm [thread:$0]  %s303_s16, 256, %s305_s19, [#allocation3]  }
 0x1da   :  { %392 = dma.done.wait [#allocation3], 256  }
 0x1db   :  { %393 = vsyncadd [#allocation3], 4294967040 }
 0x1dc   :  { %312 = vsyncpa [#allocation3], 1 }

// kernel: tpu_custom_call.1
= control target key start
LH: loop header
LB: loop body
LE: loop exit
PB: predicated region body
PF: predicated region fallthrough
CT: control target
= control target key end

     0   :  { %vm59_vm0 = vcmask 130048   ;;  %v394_v5 = vmov 0   ;;  %s523_s0 = inlined_call_operand.vmem [shape: f32[16,256], index: 0, kind: input, shape index: {}]   ;;  %s524_s1 = inlined_call_operand.vmem [shape: f32[32,16], index: 1, kind: input, shape index: {}]   ;;  %s525_s2 = inlined_call_operand.vmem [shape: f32[32,1], index: 2, kind: input, shape index: {}]   ;;  %s526_s3 = inlined_call_operand.vmem [shape: f32[32,32], index: 3, kind: input, shape index: {}]   ;;  %s527_s4 = inlined_call_operand.vmem [shape: f32[32,1], index: 4, kind: input, shape index: {}]   ;;  %s528_s5 = inlined_call_operand.vmem [shape: f32[8,32], index: 5, kind: input, shape index: {}]   ;;  %s529_s6 = inlined_call_operand.vmem [shape: f32[8,1], index: 6, kind: input, shape index: {}]   ;;  %s530_s7 = inlined_call_operand.hbm [shape: f32[8,256], index: 7, kind: output, shape index: {}]  }
   0x1   :  { %v29_v0 = vld [vmem:[%s523_s0 + $0x10] sm:$0xff]  ;;  %v30_v1 = vld [vmem:[%s523_s0 + $0x18] sm:$0xff]  ;;  %v27_v2 = vld [vmem:[%s523_s0] sm:$0xff]  ;;  %334 = vset.pattern.permute.xlu1 %v394_v5  ;;  %333 = vset.pattern.permute.xlu0 %v394_v5 }
   0x2   :  { %86 = vmatpush.msra.mxu0 %v29_v0  ;;  %115 = vmatpush.msra.mxu1 %v30_v1  ;;  %v28_v3 = vld [vmem:[%s523_s0 + $0x8] sm:$0xff]  ;;  %v31_v4 = vld [vmem:[%s524_s1] sm:$0xff]  ;;  %v38_v7 = vld [vmem:[%s525_s2 + $0x18] sm:$0xff] }
   0x3   :  { %v36_v6 = vld [vmem:[%s525_s2 + $0x8] sm:$0xff] }
   0x4   :  { %87 = vmatpush.msra.mxu0 %v27_v2  ;;  %116 = vmatpush.msra.mxu1 %v28_v3 }
   0x5   :  { %313 = vmatmul.msk.f32.vlgmr.msra.gmra.mxu0 %vm59_vm0, %v31_v4  ;;  %317 = vmatmul.msk.f32.vlgmr.msra.gmra.mxu1 %vm59_vm0, %v31_v4 }
   0x6   :  { %12 = vsyncpa [#allocation3], 0  ;;  %46 = vperm.xlu1 %334, %v36_v6   ;;  %56 = vperm.xlu0 %333, %v38_v7   ;;  %v32_v8 = vld [vmem:[%s524_s1 + $0x8] sm:$0xff]  ;;  %v35_v9 = vld [vmem:[%s525_s2] sm:$0xff]  ;;  %vm166_vm1 = vcmask 261120   ;;  %s395_s15 = smov [#allocation2]  }
   0x7   :  { %335 = vset.pattern.permute.xlu2 %v394_v5  ;;  %v37_v10 = vld [vmem:[%s525_s2 + $0x10] sm:$0xff]  ;;  %v143_v12 = vld [vmem:[%s527_s4 + $0x8] sm:$0xff]  ;;  %v142_v13 = vld [vmem:[%s527_s4] sm:$0xff]  ;;  %s302_s16 = sshll.u32 %s395_s15, 4  ;;  %s304_s19 = sshll.u32 %s530_s7, 4  ;;  %s303_s16 = int_to_ptr.vmem [resolvable:$true] %s302_s16  ;;  %s305_s19 = int_to_ptr.hbm [resolvable:$true] %s304_s19 }
   0x8   :  { %v33_v11 = vld [vmem:[%s524_s1 + $0x10] sm:$0xff]  ;;  %v34_v14 = vld [vmem:[%s524_s1 + $0x18] sm:$0xff]  ;;  %v138_v42 = vld [vmem:[%s526_s3] sm:$0xff] }
   0x9   :  { %v145_v37 = vld [vmem:[%s527_s4 + $0x18] sm:$0xff]  ;;  %v144_v45 = vld [vmem:[%s527_s4 + $0x10] sm:$0xff]  ;;  %v139_v46 = vld [vmem:[%s526_s3 + $0x8] sm:$0xff] }
   0xa   :  { %163 = vperm.xlu2 %335, %v145_v37   ;;  %v246_v47 = vld [vmem:[%s529_s6] sm:$0xff]  ;;  %v140_v48 = vld [vmem:[%s526_s3 + $0x10] sm:$0xff]  ;;  %v141_v49 = vld [vmem:[%s526_s3 + $0x18] sm:$0xff] }
   0xd   :  { %314 = vmatmul.msk.f32.gmra.mxu0 %vm59_vm0, %v32_v8  ;;  %318 = vmatmul.msk.f32.gmra.mxu1 %vm59_vm0, %v32_v8 }
   0xe   :  { %41 = vperm.xlu1 %334, %v35_v9   ;;  %51 = vperm.xlu0 %333, %v37_v10  }
  0x12   :  { %158 = vperm.xlu2 %335, %v144_v45  }
  0x15   :  { %315 = vmatmul.msk.f32.gmra.mxu0 %vm59_vm0, %v33_v11  ;;  %319 = vmatmul.msk.f32.gmra.mxu1 %vm59_vm0, %v33_v11 }
  0x16   :  { %153 = vperm.xlu0 %333, %v143_v12   ;;  %148 = vperm.xlu1 %334, %v142_v13   ;;  %v245_v12 = vld [vmem:[%s528_s5] sm:$0xff] }
  0x1a   :  { %249 = vperm.xlu2 %335, %v246_v47  }
  0x1d   :  { %316 = vmatmul.msk.f32.gmra.mxu0 %vm59_vm0, %v34_v14  ;;  %320 = vmatmul.msk.f32.gmra.mxu1 %vm59_vm0, %v34_v14 }
  0x64   :  { %v164_v54 = vpop.permute.xlu2 %163 }
  0x6c   :  { %v159_v57 = vpop.permute.xlu2 %158 }
  0x78   :  { %v57_v19 = vpop.permute.xlu0 %56  ;;  %v47_v20 = vpop.permute.xlu1 %46 }
  0x80   :  { %v52_v23 = vpop.permute.xlu0 %51  ;;  %v42_v29 = vpop.permute.xlu1 %41 }
  0x82   :  { %v89_v15 = vpop.f32.mrf.mxu0  ;;  %v118_v16 = vpop.f32.mrf.mxu1 }
  0x83   :  { %v90_v33 = vadd.f32 %v89_v15, %v42_v29  ;;  %v119_v34 = vadd.f32 %v118_v16, %v42_v29  ;;  %v250_v15 = vpop.permute.xlu2 %249 }
  0x88   :  { %v154_v62 = vpop.permute.xlu0 %153  ;;  %v149_v2 = vpop.permute.xlu1 %148 }
  0x8a   :  { %v92_v17 = vpop.f32.mrf.mxu0  ;;  %v121_v18 = vpop.f32.mrf.mxu1 }
  0x8b   :  { %v93_v31 = vadd.f32 %v92_v17, %v47_v20  ;;  %v122_v32 = vadd.f32 %v121_v18, %v47_v20 }
  0x92   :  { %v95_v21 = vpop.f32.mrf.mxu0  ;;  %v124_v22 = vpop.f32.mrf.mxu1 }
  0x93   :  { %v96_v26 = vadd.f32 %v95_v21, %v52_v23  ;;  %v125_v30 = vadd.f32 %v124_v22, %v52_v23 }
  0x9a   :  { %v98_v24 = vpop.f32.mrf.mxu0  ;;  %v127_v25 = vpop.f32.mrf.mxu1 }
  0x9b   :  { %v99_v27 = vadd.f32 %v98_v24, %v57_v19  ;;  %v128_v28 = vadd.f32 %v127_v25, %v57_v19 }
  0x9d   :  { %336 = vtanh.f32 %v99_v27 }
  0x9e   :  { %338 = vtanh.f32 %v128_v28 }
  0x9f   :  { %340 = vtanh.f32 %v96_v26 }
  0xa0   :  { %342 = vtanh.f32 %v125_v30 }
  0xa1   :  { %344 = vtanh.f32 %v93_v31 }
  0xa2   :  { %346 = vtanh.f32 %v122_v32 }
  0xa3   :  { %v337_v35 = vpop.eup %336  ;;  %348 = vtanh.f32 %v90_v33 }
  0xa4   :  { %v339_v36 = vpop.eup %338  ;;  %350 = vtanh.f32 %v119_v34  ;;  %191 = vmatpush.msra.mxu2 %v337_v35 }
  0xa5   :  { %v341_v38 = vpop.eup %340  ;;  %220 = vmatpush.msra.mxu3 %v339_v36 }
  0xa6   :  { %v343_v39 = vpop.eup %342  ;;  %192 = vmatpush.msra.mxu2 %v341_v38 }
  0xa7   :  { %v345_v40 = vpop.eup %344  ;;  %221 = vmatpush.msra.mxu3 %v343_v39 }
  0xa8   :  { %v347_v41 = vpop.eup %346  ;;  %193 = vmatpush.msra.mxu2 %v345_v40 }
  0xa9   :  { %v349_v43 = vpop.eup %348  ;;  %222 = vmatpush.msra.mxu3 %v347_v41 }
  0xaa   :  { %v351_v44 = vpop.eup %350  ;;  %194 = vmatpush.msra.mxu2 %v349_v43 }
  0xab   :  { %223 = vmatpush.msra.mxu3 %v351_v44  ;;  %321 = vmatmul.msk.f32.vlgmr.msra.gmra.mxu2 %vm166_vm1, %v138_v42 }
  0xac   :  { %325 = vmatmul.msk.f32.vlgmr.msra.gmra.mxu3 %vm166_vm1, %v138_v42 }
  0xb3   :  { %322 = vmatmul.msk.f32.gmra.mxu2 %vm166_vm1, %v139_v46 }
  0xb4   :  { %326 = vmatmul.msk.f32.gmra.mxu3 %vm166_vm1, %v139_v46 }
  0xbb   :  { %323 = vmatmul.msk.f32.gmra.mxu2 %vm166_vm1, %v140_v48 }
  0xbc   :  { %327 = vmatmul.msk.f32.gmra.mxu3 %vm166_vm1, %v140_v48 }
  0xc3   :  { %324 = vmatmul.msk.f32.gmra.mxu2 %vm166_vm1, %v141_v49 }
  0xc4   :  { %328 = vmatmul.msk.f32.gmra.mxu3 %vm166_vm1, %v141_v49 }
 0x12e   :  { %v196_v50 = vpop.f32.mrf.mxu2 }
 0x12f   :  { %v225_v51 = vpop.f32.mrf.mxu3  ;;  %v197_v4 = vadd.f32 %v196_v50, %v149_v2 }
 0x130   :  { %v226_v5 = vadd.f32 %v225_v51, %v149_v2 }
 0x136   :  { %v199_v52 = vpop.f32.mrf.mxu2 }
 0x137   :  { %v228_v53 = vpop.f32.mrf.mxu3  ;;  %v200_v1 = vadd.f32 %v199_v52, %v154_v62 }
 0x138   :  { %v229_v3 = vadd.f32 %v228_v53, %v154_v62 }
 0x13e   :  { %v202_v55 = vpop.f32.mrf.mxu2 }
 0x13f   :  { %v231_v56 = vpop.f32.mrf.mxu3  ;;  %v203_v59 = vadd.f32 %v202_v55, %v159_v57 }
 0x140   :  { %v232_v63 = vadd.f32 %v231_v56, %v159_v57 }
 0x146   :  { %v205_v58 = vpop.f32.mrf.mxu2 }
 0x147   :  { %v206_v60 = vadd.f32 %v205_v58, %v164_v54  ;;  %v234_v61 = vpop.f32.mrf.mxu3 }
 0x148   :  { %v235_v0 = vadd.f32 %v234_v61, %v164_v54 }
 0x149   :  { %352 = vtanh.f32 %v206_v60 }
 0x14a   :  { %354 = vtanh.f32 %v235_v0 }
 0x14b   :  { %356 = vtanh.f32 %v203_v59 }
 0x14c   :  { %358 = vtanh.f32 %v232_v63 }
 0x14d   :  { %360 = vtanh.f32 %v200_v1 }
 0x14e   :  { %362 = vtanh.f32 %v229_v3 }
 0x14f   :  { %v353_v6 = vpop.eup %352  ;;  %364 = vtanh.f32 %v197_v4 }
 0x150   :  { %v355_v7 = vpop.eup %354  ;;  %366 = vtanh.f32 %v226_v5  ;;  %267 = vmatpush.msrb.mxu0 %v353_v6 }
 0x151   :  { %v357_v8 = vpop.eup %356  ;;  %287 = vmatpush.msrb.mxu1 %v355_v7 }
 0x152   :  { %v359_v9 = vpop.eup %358  ;;  %268 = vmatpush.msrb.mxu0 %v357_v8 }
 0x153   :  { %v361_v10 = vpop.eup %360  ;;  %288 = vmatpush.msrb.mxu1 %v359_v9 }
 0x154   :  { %v363_v11 = vpop.eup %362  ;;  %269 = vmatpush.msrb.mxu0 %v361_v10 }
 0x155   :  { %v365_v13 = vpop.eup %364  ;;  %289 = vmatpush.msrb.mxu1 %v363_v11 }
 0x156   :  { %v367_v14 = vpop.eup %366  ;;  %270 = vmatpush.msrb.mxu0 %v365_v13 }
 0x157   :  { %290 = vmatpush.msrb.mxu1 %v367_v14  ;;  %329 = vmatmul.msk.f32.vlgmr.msrb.gmra.mxu0 %vm166_vm1, %v245_v12 }
 0x158   :  { %330 = vmatmul.msk.f32.vlgmr.msrb.gmra.mxu1 %vm166_vm1, %v245_v12 }
 0x1d4   :  { %v272_v16 = vpop.f32.mrf.mxu0 }
 0x1d5   :  { %v273_v17 = vadd.f32 %v272_v16, %v250_v15  ;;  %v292_v18 = vpop.f32.mrf.mxu1 }
 0x1d6   :  { %v293_v19 = vadd.f32 %v292_v18, %v250_v15 }
 0x1d7   :  { %295 = vst [vmem:[#allocation2] sm:$0xff] %v273_v17 }
 0x1d8   :  { %296 = vst [vmem:[#allocation2 + $0x8] sm:$0xff] %v293_v19 }
 0x1d9   :  { %307 = dma.vmem_to_hbm [thread:$0]  %s303_s16, 256, %s305_s19, [#allocation3]  }
 0x1da   :  { %392 = dma.done.wait [#allocation3], 256  }
 0x1db   :  { %393 = vsyncadd [#allocation3], 4294967040 }
 0x1dc   :  { %312 = vsyncpa [#allocation3], 1 }

</bundles_post_ra>
